<compile_context>
chip_gen: v7x
topology: tpu7x:2x2x1
jax: 0.10.0
libtpu: 0.0.40
codegen_flags: <defaults>
</compile_context>

<pallas_src>
import jax
import jax.numpy as jnp
from jax.experimental import pallas as pl
from jax.experimental.pallas import tpu as pltpu


def _round_up(x, m):
    return ((x + m - 1) // m) * m


def _cdiv(a, b):
    return (a + b - 1) // b


def _tpu_generation():
    try:
        kind = jax.devices()[0].device_kind.lower()
    except Exception:
        return "unknown"
    if "v7" in kind or "7x" in kind:
        return "v7x"
    if "v6" in kind:
        return "v6e"
    if "v5" in kind:
        return "v5e"
    return "unknown"


# Per-generation budgets (bytes / rows). v7x has 64 MiB VMEM but 2 TCs and
# 3.2 TB/s HBM; v6e has 128 MiB VMEM; v5e kept conservative.
_X_BUDGET = {"v7x": 20 << 20, "v6e": 40 << 20, "v5e": 12 << 20}
_ROW_CAP = {"v7x": 1024, "v6e": 2048, "v5e": 1024}
_PHYS_VMEM = {"v7x": 64 << 20, "v6e": 128 << 20, "v5e": 128 << 20}
_NUM_TC = {"v7x": 2, "v6e": 1, "v5e": 1}


def _choose_block_rows(N, ft_in, x_itemsize, gen):
    x_budget = _X_BUDGET.get(gen, 12 << 20)
    row_cap = _ROW_CAP.get(gen, 1024)
    num_tc = _NUM_TC.get(gen, 1)
    # Keep the double-buffered seq stream within the per-generation budget.
    rows_cap_vmem = max(8, x_budget // (2 * ft_in * x_itemsize))
    block_rows = min(row_cap, rows_cap_vmem, _round_up(N, 8))
    if num_tc > 1:
        # Load-balance the "parallel" row axis across TensorCores: choose an
        # even number of grid steps and size tiles to it (no tiny remainder TC).
        steps = _round_up(max(num_tc, _cdiv(N, block_rows)), num_tc)
        block_rows = min(block_rows, _round_up(_cdiv(N, steps), 8))
    return max(8, _round_up(block_rows, 8))


def logreg_kernel(x_ref, wt_ref, b_ref, o_ref):
    # Cast to the MXU dtype in-kernel (seq streams at its native dtype from HBM,
    # avoiding a separate cast/pad XLA pass). Matmul accumulates in f32.
    x = x_ref[...].astype(wt_ref.dtype)
    logits = jnp.dot(x, wt_ref[...], preferred_element_type=jnp.float32)
    logits = logits + b_ref[...]          # bias f32; -1e30 on padded classes

    # Numerically stable log_softmax along the class (lane) axis, all in f32.
    m = jnp.max(logits, axis=-1, keepdims=True)
    shifted = logits - m                  # padded classes -> exp() underflows to 0
    lse = jnp.log(jnp.sum(jnp.exp(shifted), axis=-1, keepdims=True))
    o_ref[...] = (shifted - lse).astype(o_ref.dtype)


def prepare_params(weight, bias, compute_dtype=jnp.bfloat16):
    """Transpose / pad the weight & bias once per weight update.

    Callers should hoist (and cache) this outside the forward loop: weights are
    grid-invariant and reused across calls.
    """
    nb_classes, _ = weight.shape
    c_pad = _round_up(nb_classes, 128)
    wt = weight.T.astype(compute_dtype)
    b2 = bias.astype(jnp.float32)
    if c_pad != nb_classes:
        wt = jnp.pad(wt, ((0, 0), (0, c_pad - nb_classes)))
        # Large-negative finite pad (not -inf): padded classes vanish after
        # softmax with zero risk of inf/NaN arithmetic.
        b2 = jnp.pad(b2, (0, c_pad - nb_classes), constant_values=-1e30)
    return wt, b2.reshape(1, c_pad)


def logreg_forward_prepared(seq, wt, b2, nb_classes, *, block_rows=None,
                            out_dtype=jnp.float32):
    """seq: (N, ft_in); wt: (ft_in, c_pad); b2: (1, c_pad)."""
    N, ft_in = seq.shape
    ft_in_w, c_pad = wt.shape
    assert ft_in_w == ft_in

    gen = _tpu_generation()
    x_itemsize = jnp.dtype(seq.dtype).itemsize
    w_itemsize = jnp.dtype(wt.dtype).itemsize
    out_itemsize = jnp.dtype(out_dtype).itemsize

    if block_rows is None:
        block_rows = _choose_block_rows(N, ft_in, x_itemsize, gen)
    else:
        block_rows = max(8, _round_up(block_rows, 8))

    grid = (_cdiv(N, block_rows),)   # no row padding: partial last block masked

    # TODO(synk): for very large ft_in add a K grid axis ("arbitrary", last) with
    # an f32 VMEM accumulator so the row tile stays large under v7x's 64 MiB VMEM.
    working_set = (2 * block_rows * ft_in * x_itemsize       # double-buffered seq
                   + ft_in * c_pad * w_itemsize              # single-buffered W^T
                   + c_pad * 4                               # bias
                   + 2 * block_rows * c_pad * out_itemsize)  # double-buffered out
    phys = _PHYS_VMEM.get(gen, 64 << 20)
    vmem_limit = int(min(phys - (8 << 20),
                         max(working_set + (8 << 20), 32 << 20)))

    cost = pl.CostEstimate(
        flops=2 * N * ft_in * c_pad,
        transcendentals=N * c_pad + N,    # exp per element + log per row
        bytes_accessed=(N * ft_in * x_itemsize + ft_in * c_pad * w_itemsize
                        + c_pad * 4 + N * c_pad * out_itemsize),
    )

    out = pl.pallas_call(
        logreg_kernel,
        out_shape=jax.ShapeDtypeStruct((N, c_pad), out_dtype),
        grid_spec=pltpu.PrefetchScalarGridSpec(
            num_scalar_prefetch=0,
            grid=grid,
            in_specs=[
                # streamed row tiles of seq (double-buffered by default)
                pl.BlockSpec((block_rows, ft_in), lambda i: (i, 0)),
                # grid-invariant weight / bias: single-buffer them
                pl.BlockSpec((ft_in, c_pad), lambda i: (0, 0),
                             pipeline_mode=pl.Buffered(1)),
                pl.BlockSpec((1, c_pad), lambda i: (0, 0),
                             pipeline_mode=pl.Buffered(1)),
            ],
            out_specs=pl.BlockSpec((block_rows, c_pad), lambda i: (i, 0)),
        ),
        compiler_params=pltpu.CompilerParams(
            dimension_semantics=("parallel",),
            vmem_limit_bytes=vmem_limit,
        ),
        cost_estimate=cost,
    )(seq, wt, b2)

    if c_pad != nb_classes:
        # TODO(synk): fuse the downstream consumer (gather / NLL loss) into the
        # kernel to avoid this extra pass over the padded log-prob block.
        out = out[:, :nb_classes]
    return out


def logreg_forward(seq, weight, bias, *, block_rows=None,
                   compute_dtype=jnp.bfloat16, out_dtype=jnp.float32):
    """Convenience wrapper: seq (N, ft_in), weight (nb_classes, ft_in), bias (nb_classes,).

    Returns (N, nb_classes) = log_softmax(seq @ weight.T + bias, axis=-1).
    For repeated forwards with fixed weights, call prepare_params() once and use
    logreg_forward_prepared() directly.
    """
    wt, b2 = prepare_params(weight, bias, compute_dtype)
    return logreg_forward_prepared(seq, wt, b2, weight.shape[0],
                                   block_rows=block_rows, out_dtype=out_dtype)


def xavier_uniform(key, shape, dtype=jnp.float32):
    # torch.nn.init.xavier_uniform_ for a Linear weight of shape (out, in)
    fan_out, fan_in = shape
    limit = (6.0 / (fan_in + fan_out)) ** 0.5
    return jax.random.uniform(key, shape, dtype, minval=-limit, maxval=limit)


if __name__ == "__main__":
    # Small shapes consistent with LogReg(ft_in, nb_classes)
    N, ft_in, nb_classes = 8, 32, 8

    key = jax.random.PRNGKey(0)
    k_seq, k_w, k_seq2 = jax.random.split(key, 3)

    seq = jax.random.normal(k_seq, (N, ft_in), dtype=jnp.float32)
    weight = xavier_uniform(k_w, (nb_classes, ft_in))   # fc.weight
    bias = jnp.zeros((nb_classes,), dtype=jnp.float32)  # fc.bias.fill_(0.0)

    out = jax.block_until_ready(logreg_forward(seq, weight, bias))
    assert out.shape == (N, nb_classes)

    # Reference (same math as torch.log_softmax(self.fc(seq), dim=-1)).
    ref = jax.nn.log_softmax(seq @ weight.T + bias, axis=-1)
    assert jnp.allclose(out, ref, atol=3e-2, rtol=3e-2), "bf16 mismatch vs reference"

    # Structural check at full precision (same kernel, f32 MXU operands).
    out_f32 = jax.block_until_ready(
        logreg_forward(seq, weight, bias, compute_dtype=jnp.float32))
    assert jnp.allclose(out_f32, ref, atol=1e-5, rtol=1e-5), "f32 mismatch vs reference"

    # Ragged test: N not divisible by block_rows (partial last block is masked).
    N2 = 77
    seq2 = jax.random.normal(k_seq2, (N2, ft_in), dtype=jnp.float32)
    out2 = jax.block_until_ready(
        logreg_forward(seq2, weight, bias, block_rows=16))
    ref2 = jax.nn.log_softmax(seq2 @ weight.T + bias, axis=-1)
    assert out2.shape == (N2, nb_classes)
    assert jnp.allclose(out2, ref2, atol=3e-2, rtol=3e-2), "ragged mismatch vs reference"
    assert jnp.isfinite(out2).all(), "NaN/Inf leaked from the masked partial block"

    print("KERNEL_OK")
</pallas_src>

<mosaic_0001>
module attributes {stable_mosaic.version = 11 : i64} {
  func.func @logreg_kernel(%arg0: i32, %arg1: memref<8x32xf32, #tpu.memory_space<vmem>>, %arg2: memref<32x128xbf16, #tpu.memory_space<vmem>>, %arg3: memref<1x128xf32, #tpu.memory_space<vmem>>, %arg4: memref<8x128xf32, #tpu.memory_space<vmem>>) attributes {dimension_semantics = [#tpu.dimension_semantics<parallel>], iteration_bounds = array<i64: 1>, scalar_prefetch = 0 : i64, scratch_operands = 0 : i64, tpu.core_type = #tpu.core_type<tc>, window_params = [{transform_indices = @transform_0, window_bounds = array<i64: 8, 32>}, {pipeline_mode = #tpu.pipeline_mode<synchronous>, transform_indices = @transform_1, window_bounds = array<i64: 32, 128>}, {pipeline_mode = #tpu.pipeline_mode<synchronous>, transform_indices = @transform_2, window_bounds = array<i64: 1, 128>}, {transform_indices = @transform_3, window_bounds = array<i64: 8, 128>}]} {
    %c0 = arith.constant 0 : index
    %c0_0 = arith.constant 0 : index
    %0 = vector.load %arg1[%c0, %c0_0] : memref<8x32xf32, #tpu.memory_space<vmem>>, vector<8x32xf32>
    %1 = arith.truncf %0 : vector<8x32xf32> to vector<8x32xbf16>
    %c0_1 = arith.constant 0 : index
    %c0_2 = arith.constant 0 : index
    %2 = vector.load %arg2[%c0_1, %c0_2] : memref<32x128xbf16, #tpu.memory_space<vmem>>, vector<32x128xbf16>
    %cst = arith.constant dense<0.000000e+00> : vector<8x128xf32>
    %3 = tpu.matmul %1, %2, %cst {dimension_numbers = #tpu.dot_dimension_numbers<[1], [0], [0], [1], [0, 0, 1, 1], [], []>} : vector<8x32xbf16>, vector<32x128xbf16>, vector<8x128xf32> -> vector<8x128xf32>
    %c0_3 = arith.constant 0 : index
    %c0_4 = arith.constant 0 : index
    %4 = vector.load %arg3[%c0_3, %c0_4] : memref<1x128xf32, #tpu.memory_space<vmem>>, vector<1x128xf32>
    %5 = vector.broadcast %4 : vector<1x128xf32> to vector<8x128xf32>
    %6 = arith.addf %3, %5 : vector<8x128xf32>
    %cst_5 = arith.constant dense<0xFF800000> : vector<8xf32>
    %7 = vector.multi_reduction <maximumf>, %6, %cst_5 [1] : vector<8x128xf32> to vector<8xf32>
    %8 = vector.shape_cast %7 : vector<8xf32> to vector<8x1xf32>
    %9 = vector.broadcast %8 : vector<8x1xf32> to vector<8x128xf32>
    %10 = arith.subf %6, %9 : vector<8x128xf32>
    %11 = math.exp %10 : vector<8x128xf32>
    %cst_6 = arith.constant dense<0.000000e+00> : vector<8xf32>
    %12 = vector.multi_reduction <add>, %11, %cst_6 [1] : vector<8x128xf32> to vector<8xf32>
    %13 = vector.shape_cast %12 : vector<8xf32> to vector<8x1xf32>
    %14 = math.log %13 : vector<8x1xf32>
    %15 = vector.broadcast %14 : vector<8x1xf32> to vector<8x128xf32>
    %16 = arith.subf %10, %15 : vector<8x128xf32>
    %c0_7 = arith.constant 0 : index
    %c0_8 = arith.constant 0 : index
    %17 = vector.load %arg4[%c0_7, %c0_8] : memref<8x128xf32, #tpu.memory_space<vmem>>, vector<8x128xf32>
    tpu.vector_store %arg4[%c0_7, %c0_8], %16 {strides = array<i32>} : memref<8x128xf32, #tpu.memory_space<vmem>>, vector<8x128xf32>,
    return
  }
  func.func @transform_0(%arg0: i32) -> (i32, i32) {
    %c0_i32 = arith.constant 0 : i32
    %c0_i32_0 = arith.constant 0 : i32
    return %arg0, %c0_i32 : i32, i32
  }
  func.func @transform_1(%arg0: i32) -> (i32, i32) {
    %c0_i32 = arith.constant 0 : i32
    %c0_i32_0 = arith.constant 0 : i32
    %c0_i32_1 = arith.constant 0 : i32
    return %c0_i32, %c0_i32_0 : i32, i32
  }
  func.func @transform_2(%arg0: i32) -> (i32, i32) {
    %c0_i32 = arith.constant 0 : i32
    %c0_i32_0 = arith.constant 0 : i32
    %c0_i32_1 = arith.constant 0 : i32
    return %c0_i32, %c0_i32_0 : i32, i32
  }
  func.func @transform_3(%arg0: i32) -> (i32, i32) {
    %c0_i32 = arith.constant 0 : i32
    %c0_i32_0 = arith.constant 0 : i32
    return %arg0, %c0_i32 : i32, i32
  }
}

</mosaic_0001>

<bundles_post_ra>
// kernel: tpu_custom_call.1
= control target key start
LH: loop header
LB: loop body
LE: loop exit
PB: predicated region body
PF: predicated region fallthrough
CT: control target
= control target key end

     0   :  { %8 = vsyncpa [#allocation3], 0  ;;  %s311_s0 = inlined_call_operand.hbm [shape: f32[8,32], index: 0, kind: input, shape index: {}]   ;;  %s312_s1 = inlined_call_operand.hbm [shape: bf16[32,128], index: 1, kind: input, shape index: {}]   ;;  %s313_s2 = inlined_call_operand.vmem [shape: f32[1,128], index: 2, kind: input, shape index: {}]   ;;  %s314_s3 = inlined_call_operand.hbm [shape: f32[8,128], index: 3, kind: output, shape index: {}]  }
   0x1   :  { %9 = vsyncpa [#allocation6], 0 }
   0x2   :  { %10 = vsyncpa [#allocation4], 0  ;;  %s238_s12 = smov [#allocation2]   ;;  %s239_s14 = smov [#allocation5]  }
   0x3   :  { %s17_s13 = sshll.u32 %s238_s12, 4  ;;  %s26_s15 = sshll.u32 %s239_s14, 4  ;;  %s18_s13 = int_to_ptr.vmem [resolvable:$true] %s17_s13  ;;  %s265_s15 = int_to_ptr.vmem [resolvable:$true] %s26_s15 }
   0x4   :  { %s166_s18 = scalar_lea.hbm %s311_s0, 128 }
   0x5   :  { %p167_p0 = scmp.ne.s32.totalorder %s311_s0, %s166_s18  ;;  %p170_p1 = scmp.lt.u32.totalorder %s166_s18, %s311_s0 }
   0x7   :  { %p172_p2 = pnand %p170_p1, %p167_p0 }
   0x9   :  { %175 = shalt.err (!%p172_p2)
}
   0xa   :  { %s176_s23 = scalar_lea.vmem %s18_s13, 128  ;;  %p181_p4 = scmp.lt.s32.totalorder %s18_s13, %s18_s13 }
   0xb   :  { %p177_p3 = scmp.ne.s32.totalorder %s18_s13, %s176_s23  ;;  %p182_p5 = scmp.lt.s32.totalorder %s176_s23, %s176_s23 }
   0xd   :  { %p183_p6 = por %p182_p5, %p181_p4 }
   0xf   :  { %p184_p7 = pnand %p183_p6, %p177_p3 }
  0x11   :  { %187 = shalt.err (!%p184_p7)
}
  0x12   :  { %20 = dma.hbm_to_vmem [thread:$0]  %s311_s0, 128, %s18_s13, [#allocation3]  }
  0x13   :  { %s188_s28 = scalar_lea.hbm %s312_s1, 256 }
  0x14   :  { %p189_p8 = scmp.ne.s32.totalorder %s312_s1, %s188_s28  ;;  %p192_p9 = scmp.lt.u32.totalorder %s188_s28, %s312_s1 }
  0x16   :  { %p194_p10 = pnand %p192_p9, %p189_p8 }
  0x18   :  { %197 = shalt.err (!%p194_p10)
}
  0x19   :  { %s198_s6 = scalar_lea.vmem %s265_s15, 256  ;;  %p203_p12 = scmp.lt.s32.totalorder %s265_s15, %s265_s15 }
  0x1a   :  { %p199_p11 = scmp.ne.s32.totalorder %s265_s15, %s198_s6  ;;  %p204_p13 = scmp.lt.s32.totalorder %s198_s6, %s198_s6 }
  0x1c   :  { %p205_p0 = por %p204_p13, %p203_p12 }
  0x1e   :  { %p206_p1 = pnand %p205_p0, %p199_p11 }
  0x20   :  { %209 = shalt.err (!%p206_p1)
}
  0x21   :  { %s240_s0 = smov 64   ;;  %s241_s7 = smov 4  }
  0x22   :  { %32 = dma.hbm_to_vmem [thread:$0]  %s312_s1, 256, %s265_s15, [#allocation6], %s240_s0, %s240_s0, %s241_s7  }
  0x23   :  { %232 = dma.done.wait [#allocation3], 128  }
  0x24   :  { %233 = vsyncadd [#allocation3], 4294967168 }
  0x25   :  { %234 = dma.done.wait [#allocation6], 256  }
  0x26   :  { %235 = vsyncadd [#allocation6], 4294967040  ;;  %v242_v0 = vmov 0.0   ;;  %vm243_vm0 = vmmov 0   ;;  %v160_v1 = vld [vmem:[#allocation5] sm:$0xff]   ;;  %v161_v2 = vld [vmem:[#allocation5 + $0x8] sm:$0xff]  }
  0x27   :  { %145 = vmatprep.subr.bf16.mxu0 %v242_v0  ;;  %149 = vmatprep.mubr.msk.bf16.mxu0 %vm243_vm0, %v242_v0  ;;  %v42_v3 = vld [vmem:[#allocation2] sm:$0xff]  ;;  %vm67_vm1 = vcmask 261120   ;;  %s244_s1 = smov [#allocation7]  }
  0x28   :  { %146 = vmatpush3.bf16.msra.mxu0 %v160_v1  ;;  %v43_v4 = vpack.c.bf16 %v42_v3, %v42_v3  ;;  %v138_v5 = vld [vmem:[%s313_s2] ss:$0 sm:$0xff]  ;;  %s128_s12 = sshll.u32 %s244_s1, 4  ;;  %s129_s12 = int_to_ptr.vmem [resolvable:$true] %s128_s12 }
  0x29   :  { %147 = vmatprep.subr.bf16.mxu0 %v242_v0  ;;  %s210_s2 = scalar_lea.vmem %s129_s12, 128  ;;  %p215_p3 = scmp.lt.s32.totalorder %s129_s12, %s129_s12 }
  0x2a   :  { %p211_p2 = scmp.ne.s32.totalorder %s129_s12, %s210_s2  ;;  %p216_p4 = scmp.lt.s32.totalorder %s210_s2, %s210_s2 }
  0x2c   :  { %148 = vmatpush3.bf16.msra.mxu0 %v161_v2  ;;  %p217_p5 = por %p216_p4, %p215_p3 }
  0x2e   :  { %p218_p6 = pnand %p217_p5, %p211_p2 }
  0x2f   :  { %150 = vmatmul.mubr.msk.bf16.vlgmr.msra.gmra.mrb[0].mxu0 %vm67_vm1, %v43_v4 }
 0x102   :  { %v105_v6 = vpop.f32.mrb[0].mxu0 }
 0x103   :  { %v106_v7 = vadd.f32 %v138_v5, %v105_v6  ;;  %v151_v8 = vpop.f32.mrb[1].mxu0 }
 0x104   :  { %v108_v9 = vpop.f32.mrb[2].mxu0 }
 0x105   :  { %111 = vmax.xlane.f32.xlu0 %v106_v7  ;;  %v152_v10 = vpop.f32.mrb[3].mxu0 }
 0x192   :  { %v112_v11 = vpop.xlane.xlu0 %111 }
 0x193   :  { %v113_v12 = vsub.f32 %v106_v7, %v112_v11 }
 0x195   :  { %v114_v13 = vmul.f32 1.442695, %v113_v12 }
 0x197   :  { %162 = vpow2.f32 %v114_v13 }
 0x1a1   :  { %v163_v14 = vpop.eup %162 }
 0x1a2   :  { %116 = vadd.xlane.f32.xlu0 %v163_v14 }
 0x22f   :  { %v117_v15 = vpop.xlane.xlu0 %116 }
 0x230   :  { %164 = vlog2.f32 %v117_v15 }
 0x23a   :  { %v165_v16 = vpop.eup %164 }
 0x23b   :  { %v119_v17 = vmul.f32 0.6931472, %v165_v16 }
 0x23d   :  { %v120_v18 = vsub.f32 %v113_v12, %v119_v17 }
 0x23f   :  { %121 = vst [vmem:[#allocation7] sm:$0xff] %v120_v18 }
 0x240   :  { %221 = shalt.err (!%p218_p6)
}
 0x241   :  { %s222_s15 = scalar_lea.hbm %s314_s3, 128 }
 0x242   :  { %p223_p7 = scmp.ne.s32.totalorder %s314_s3, %s222_s15  ;;  %p226_p8 = scmp.lt.u32.totalorder %s222_s15, %s314_s3 }
 0x244   :  { %p228_p9 = pnand %p226_p8, %p223_p7 }
 0x246   :  { %231 = shalt.err (!%p228_p9)
}
 0x247   :  { %131 = dma.vmem_to_hbm [thread:$0]  %s129_s12, 128, %s314_s3, [#allocation4]  }
 0x248   :  { %236 = dma.done.wait [#allocation4], 128  }
 0x249   :  { %237 = vsyncadd [#allocation4], 4294967168 }
 0x24a   :  { %135 = vsyncpa [#allocation3], 1 }
 0x24b   :  { %136 = vsyncpa [#allocation6], 1 }
 0x24c   :  { %137 = vsyncpa [#allocation4], 1 }

</bundles_post_ra>
